<compile_context>
chip_gen: v7x
topology: tpu7x:2x2x1
jax: 0.10.0
libtpu: 0.0.40
codegen_flags: <defaults>
</compile_context>

<pallas_src>
import jax
import jax.numpy as jnp
from jax.experimental import pallas as pl
from jax.experimental.pallas import tpu as pltpu

LANE = 128


def _round_up(x, m):
    return ((x + m - 1) // m) * m


def _vmem_budget_bytes():
    """Conservative per-kernel VMEM budget, scaled by the actual chip if known."""
    cap = 64 * 1024 * 1024  # conservative fallback (v7x physical VMEM)
    try:
        cap = pltpu.get_tpu_info().vmem_capacity_bytes
    except Exception:
        pass
    # Stay well under the scoped limit requested below on every generation.
    return min(max(cap // 8, 8 * 1024 * 1024), 24 * 1024 * 1024)


def _pick_tile_h(H, W, cin3_p, cout_p, budget):
    """Largest divisor TH of H whose double-buffered blocks + scratch fit budget."""
    fixed = 3 * cin3_p * cout_p * 2 + cout_p * 4          # resident weights + bias
    legal = [th for th in range(1, H + 1)
             if H % th == 0 and ((th * W) % 8 == 0 or th == H)]
    best = legal[0]
    for th in legal:
        need = (fixed
                + (th + 2) * W * cin3_p * 2 * 2           # input tile (bf16, 2 bufs)
                + th * W * cout_p * 4 * 2                 # output tile (f32, 2 bufs)
                + th * W * 3 * cin3_p * 2                 # in-kernel im2col patch
                + th * W * cout_p * 4)                    # f32 matmul result
        if need <= budget:
            best = th
    return best


def _conv3x3_bias_relu_kernel(x_ref, w_ref, b_ref, o_ref):
    """One (batch, H-tile) grid step.

    x_ref: (1, TH+2, W, 3*Cin_p)  bf16  kw-unfolded input rows incl. halo
    w_ref: (9*Cin_p, Cout_p)      bf16  (kh, kw, cin)-major filter matrix
    b_ref: (1, Cout_p)            f32
    o_ref: (1, TH*W, Cout_p)      lane-dense output tile
    """
    th_halo, w_dim, cin3 = x_ref.shape[1], x_ref.shape[2], x_ref.shape[3]
    th = th_halo - 2
    cout_p = o_ref.shape[2]

    xt = x_ref[0]                                              # (TH+2, W, 3*Cin_p)
    # Full im2col patch: three cheap leading-axis shifts, lane-aligned concat.
    patch = jnp.concatenate([xt[kh:kh + th] for kh in range(3)], axis=-1)
    patch = patch.reshape(th * w_dim, 3 * cin3)                # (TH*W, 9*Cin_p)

    # Single fused matmul, K = 9*Cin_p, f32 accumulation on the MXU.
    acc = jnp.dot(patch, w_ref[...], preferred_element_type=jnp.float32)
    acc = jnp.maximum(acc + b_ref[...], 0.0)                   # bias + ReLU
    o_ref[...] = acc.reshape(1, th * w_dim, cout_p).astype(o_ref.dtype)


def conv_forward(x_nchw, weight, bias, *, tile_h=None, compute_dtype=jnp.bfloat16):
    """y = ReLU(Conv2d(x, k=3, s=1, p=1, bias=True)); NCHW in / NCHW out."""
    N, Cin, H, W = x_nchw.shape
    Cout, Cin_w, KH, KW = weight.shape
    assert Cin_w == Cin, f"{Cin_w} {Cin}"
    assert (KH, KW) == (3, 3), "only kernel_size=3 implemented"
    out_dtype = x_nchw.dtype

    cin_p = _round_up(Cin, LANE)
    cout_p = _round_up(Cout, LANE)
    cin3_p = 3 * cin_p

    if tile_h is None:
        tile_h = _pick_tile_h(H, W, cin3_p, cout_p, _vmem_budget_bytes())
    assert H % tile_h == 0, "tile_h must divide H"
    assert (tile_h * W) % 8 == 0 or tile_h == H
    n_tiles = H // tile_h
    n_steps = N * n_tiles

    # ---- single staging pass (fused by XLA) ----------------------------------
    # NCHW -> NHWC, bf16, lane-pad channels, spatial pad by 1.
    x = jnp.transpose(x_nchw, (0, 2, 3, 1)).astype(compute_dtype)
    x = jnp.pad(x, ((0, 0), (1, 1), (1, 1), (0, cin_p - Cin)))
    # kw-im2col: fold the three horizontal taps into the (lane) channel axis.
    xk = jnp.concatenate([x[:, :, kw:kw + W, :] for kw in range(3)], axis=-1)
    # Cut into H tiles *with* halo rows -> non-overlapping Blocked BlockSpecs.
    x_tiles = jnp.stack(
        [xk[:, t * tile_h:t * tile_h + tile_h + 2] for t in range(n_tiles)], axis=1)
    x_tiles = x_tiles.reshape(n_steps, tile_h + 2, W, cin3_p)

    # Filter as one tile-aligned (9*Cin_p, Cout_p) matrix, (kh, kw, cin)-major.
    w = jnp.transpose(weight, (2, 3, 1, 0)).astype(compute_dtype)       # (3,3,Cin,Cout)
    w = jnp.pad(w, ((0, 0), (0, 0), (0, cin_p - Cin), (0, cout_p - Cout)))
    w2d = w.reshape(9 * cin_p, cout_p)
    b2d = jnp.pad(bias.astype(jnp.float32), (0, cout_p - Cout)).reshape(1, cout_p)

    out = pl.pallas_call(
        _conv3x3_bias_relu_kernel,
        out_shape=jax.ShapeDtypeStruct((n_steps, tile_h * W, cout_p), out_dtype),
        grid_spec=pltpu.PrefetchScalarGridSpec(
            num_scalar_prefetch=0,
            grid=(n_steps,),
            in_specs=[
                pl.BlockSpec((1, tile_h + 2, W, cin3_p), lambda i: (i, 0, 0, 0)),
                pl.BlockSpec((9 * cin_p, cout_p), lambda i: (0, 0)),   # VMEM-resident
                pl.BlockSpec((1, cout_p), lambda i: (0, 0)),           # VMEM-resident
            ],
            out_specs=pl.BlockSpec((1, tile_h * W, cout_p), lambda i: (i, 0, 0)),
        ),
        compiler_params=pltpu.CompilerParams(
            dimension_semantics=("parallel",),       # shard steps across TCs (v7x)
            vmem_limit_bytes=48 * 1024 * 1024,
        ),
    )(x_tiles, w2d, b2d)

    # (N*HT, TH*W, Cout_p) -> (N, H, W, Cout) -> NCHW.
    out = out.reshape(N, H, W, cout_p)[..., :Cout]
    return jnp.transpose(out, (0, 3, 1, 2))


if __name__ == "__main__":
    key = jax.random.PRNGKey(0)
    k_x, k_w, k_b = jax.random.split(key, 3)

    N, Cin, Cout, H, W = 2, 4, 8, 16, 16
    x = jax.random.normal(k_x, (N, Cin, H, W), dtype=jnp.float32)
    weight = jax.random.normal(k_w, (Cout, Cin, 3, 3), dtype=jnp.float32) * 0.1
    bias = jax.random.normal(k_b, (Cout,), dtype=jnp.float32) * 0.1

    fwd = jax.jit(conv_forward, static_argnames=("tile_h",))
    out = fwd(x, weight, bias, tile_h=8)     # exercise the H-tiling path (2 tiles)
    out_auto = fwd(x, weight, bias)          # auto-picked tile size
    jax.block_until_ready((out, out_auto))

    # Reference: XLA conv on the same bf16-rounded inputs, f32 accumulation.
    xb = x.astype(jnp.bfloat16).astype(jnp.float32)
    wb = weight.astype(jnp.bfloat16).astype(jnp.float32)
    ref = jax.lax.conv_general_dilated(
        xb, wb, window_strides=(1, 1), padding=((1, 1), (1, 1)),
        dimension_numbers=("NCHW", "OIHW", "NCHW"),
        precision=jax.lax.Precision.HIGHEST)
    ref = jnp.maximum(ref + bias[None, :, None, None], 0.0)

    assert out.shape == (N, Cout, H, W)
    assert jnp.allclose(out, ref, atol=2e-3, rtol=2e-3), \
        float(jnp.max(jnp.abs(out - ref)))
    assert jnp.allclose(out_auto, ref, atol=2e-3, rtol=2e-3)
    print("KERNEL_OK")
</pallas_src>

<mosaic_0001>
module attributes {stable_mosaic.version = 11 : i64} {
  func.func @_conv3x3_bias_relu_kernel(%arg0: i32, %arg1: memref<1x10x16x384xbf16, #tpu.memory_space<vmem>>, %arg2: memref<1152x128xbf16, #tpu.memory_space<vmem>>, %arg3: memref<1x128xf32, #tpu.memory_space<vmem>>, %arg4: memref<1x128x128xf32, #tpu.memory_space<vmem>>) attributes {dimension_semantics = [#tpu.dimension_semantics<parallel>], iteration_bounds = array<i64: 4>, scalar_prefetch = 0 : i64, scratch_operands = 0 : i64, tpu.core_type = #tpu.core_type<tc>, window_params = [{transform_indices = @transform_0, window_bounds = array<i64: 1, 10, 16, 384>}, {pipeline_mode = #tpu.pipeline_mode<synchronous>, transform_indices = @transform_1, window_bounds = array<i64: 1152, 128>}, {pipeline_mode = #tpu.pipeline_mode<synchronous>, transform_indices = @transform_2, window_bounds = array<i64: 1, 128>}, {transform_indices = @transform_3, window_bounds = array<i64: 1, 128, 128>}]} {
    %c0 = arith.constant 0 : index
    %c0_0 = arith.constant 0 : index
    %c0_1 = arith.constant 0 : index
    %c0_2 = arith.constant 0 : index
    %0 = vector.load %arg1[%c0, %c0_0, %c0_1, %c0_2] : memref<1x10x16x384xbf16, #tpu.memory_space<vmem>>, vector<1x10x16x384xbf16>
    %1 = vector.shape_cast %0 : vector<1x10x16x384xbf16> to vector<10x16x384xbf16>
    %2 = vector.extract_strided_slice %1 {offsets = [0, 0, 0], sizes = [8, 16, 384], strides = [1, 1, 1]} : vector<10x16x384xbf16> to vector<8x16x384xbf16>
    %3 = vector.extract_strided_slice %1 {offsets = [1, 0, 0], sizes = [8, 16, 384], strides = [1, 1, 1]} : vector<10x16x384xbf16> to vector<8x16x384xbf16>
    %4 = vector.extract_strided_slice %1 {offsets = [2, 0, 0], sizes = [8, 16, 384], strides = [1, 1, 1]} : vector<10x16x384xbf16> to vector<8x16x384xbf16>
    %5 = tpu.concatenate %2, %3, %4 in 2 : vector<8x16x384xbf16>, vector<8x16x384xbf16>, vector<8x16x384xbf16> -> vector<8x16x1152xbf16>
    %6 = vector.shape_cast %5 : vector<8x16x1152xbf16> to vector<128x1152xbf16>
    %c0_3 = arith.constant 0 : index
    %c0_4 = arith.constant 0 : index
    %7 = vector.load %arg2[%c0_3, %c0_4] : memref<1152x128xbf16, #tpu.memory_space<vmem>>, vector<1152x128xbf16>
    %cst = arith.constant dense<0.000000e+00> : vector<128x128xf32>
    %8 = tpu.matmul %6, %7, %cst {dimension_numbers = #tpu.dot_dimension_numbers<[1], [0], [0], [1], [0, 0, 1, 1], [], []>} : vector<128x1152xbf16>, vector<1152x128xbf16>, vector<128x128xf32> -> vector<128x128xf32>
    %c0_5 = arith.constant 0 : index
    %c0_6 = arith.constant 0 : index
    %9 = vector.load %arg3[%c0_5, %c0_6] : memref<1x128xf32, #tpu.memory_space<vmem>>, vector<1x128xf32>
    %10 = vector.broadcast %9 : vector<1x128xf32> to vector<128x128xf32>
    %11 = arith.addf %8, %10 : vector<128x128xf32>
    %cst_7 = arith.constant 0.000000e+00 : f32
    %12 = vector.broadcast %cst_7 : f32 to vector<128x128xf32>
    %13 = arith.maximumf %11, %12 : vector<128x128xf32>
    %14 = vector.shape_cast %13 : vector<128x128xf32> to vector<1x128x128xf32>
    %c0_8 = arith.constant 0 : index
    %c0_9 = arith.constant 0 : index
    %c0_10 = arith.constant 0 : index
    %15 = vector.load %arg4[%c0_8, %c0_9, %c0_10] : memref<1x128x128xf32, #tpu.memory_space<vmem>>, vector<1x128x128xf32>
    tpu.vector_store %arg4[%c0_8, %c0_9, %c0_10], %14 {strides = array<i32>} : memref<1x128x128xf32, #tpu.memory_space<vmem>>, vector<1x128x128xf32>,
    return
  }
  func.func @transform_0(%arg0: i32) -> (i32, i32, i32, i32) {
    %c0_i32 = arith.constant 0 : i32
    %c0_i32_0 = arith.constant 0 : i32
    %c0_i32_1 = arith.constant 0 : i32
    %c0_i32_2 = arith.constant 0 : i32
    return %arg0, %c0_i32, %c0_i32_0, %c0_i32_1 : i32, i32, i32, i32
  }
  func.func @transform_1(%arg0: i32) -> (i32, i32) {
    %c0_i32 = arith.constant 0 : i32
    %c0_i32_0 = arith.constant 0 : i32
    %c0_i32_1 = arith.constant 0 : i32
    return %c0_i32, %c0_i32_0 : i32, i32
  }
  func.func @transform_2(%arg0: i32) -> (i32, i32) {
    %c0_i32 = arith.constant 0 : i32
    %c0_i32_0 = arith.constant 0 : i32
    %c0_i32_1 = arith.constant 0 : i32
    return %c0_i32, %c0_i32_0 : i32, i32
  }
  func.func @transform_3(%arg0: i32) -> (i32, i32, i32) {
    %c0_i32 = arith.constant 0 : i32
    %c0_i32_0 = arith.constant 0 : i32
    %c0_i32_1 = arith.constant 0 : i32
    return %arg0, %c0_i32, %c0_i32_0 : i32, i32, i32
  }
}

</mosaic_0001>

<bundles_post_ra>
// kernel: conv_forward.1
= control target key start
LH: loop header
LB: loop body
LE: loop exit
PB: predicated region body
PF: predicated region fallthrough
CT: control target
= control target key end

     0   :  { %s2110_s12 = smov 0   ;;  %s2602_s0 = inlined_call_operand.vmem [shape: bf16[4,10,16,384], index: 0, kind: input, shape index: {}]   ;;  %s2603_s1 = inlined_call_operand.vmem [shape: bf16[1152,128], index: 1, kind: input, shape index: {}]   ;;  %s2604_s2 = inlined_call_operand.vmem [shape: f32[1,128], index: 2, kind: input, shape index: {}]   ;;  %s2605_s3 = inlined_call_operand.vmem [shape: f32[4,128,128], index: 3, kind: output, shape index: {}]  }
   0x1 LB: > { %s1527_s13 = sadd.s32 4294967295, %s2088_s12   ;;  %p1531_p0 = scmp.ge.s32.totalorder %s2088_s12, 1  ;;  %s2088_s12 = sphi %s2110_s12, %s13_s12  }
   0x2   : > { %p137_p1 = scmp.lt.s32.totalorder %s2088_s12, 5 }
   0x4   : > { %p138_p2 = pnand %p1531_p0, %p137_p1 }
   0x5   : > { %v1970_v0 = vld [vmem:[%s2603_s1 + $0x40] sm:$0xff] (!%p138_p2)   ;;  %v1974_v4 = vld [vmem:[%s2603_s1 + $0x48] sm:$0xff] (!%p138_p2)   ;;  %v1978_v8 = vld [vmem:[%s2603_s1 + $0x50] sm:$0xff] (!%p138_p2)   ;;  %p161_p3 = scmp.lt.s32.totalorder (!%p138_p2), %s1527_s13, 3 }
   0x6   : > { %141 = sbr.rel (%p138_p2) target bundleno = 396 (0x18c), region = 32  ;;  %v1971_v1 = vld [vmem:[%s2603_s1 + $0xc0] sm:$0xff] (!%p138_p2)   ;;  %1641 = vmatprep.subr.bf16.mxu0 (!%p138_p2), %v1970_v0  ;;  %v1975_v5 = vld [vmem:[%s2603_s1 + $0xc8] sm:$0xff] (!%p138_p2)   ;;  %v1979_v9 = vld [vmem:[%s2603_s1 + $0xd0] sm:$0xff] (!%p138_p2)  }
   0x7   : > { %v1972_v2 = vld [vmem:[%s2603_s1] sm:$0xff] (!%p138_p2)   ;;  %1705 = vmatprep.subr.bf16.mxu1 (!%p138_p2), %v1971_v1  ;;  %v1976_v6 = vld [vmem:[%s2603_s1 + $0x8] sm:$0xff] (!%p138_p2)   ;;  %v1980_v10 = vld [vmem:[%s2603_s1 + $0x10] sm:$0xff] (!%p138_p2)  }
   0x8   : > { %v1973_v3 = vld [vmem:[%s2603_s1 + $0x80] sm:$0xff] (!%p138_p2)   ;;  %1642 = vmatpush3.bf16.msra.mxu0 (!%p138_p2), %v1972_v2  ;;  %v1977_v7 = vld [vmem:[%s2603_s1 + $0x88] sm:$0xff] (!%p138_p2)   ;;  %v1981_v11 = vld [vmem:[%s2603_s1 + $0x90] sm:$0xff] (!%p138_p2)  }
   0x9   : > { %1706 = vmatpush3.bf16.msra.mxu1 (!%p138_p2), %v1973_v3  ;;  %1643 = vmatprep.subr.bf16.mxu0 (!%p138_p2), %v1974_v4  ;;  %v1982_v12 = vld [vmem:[%s2603_s1 + $0x58] sm:$0xff] (!%p138_p2)   ;;  %v1986_v16 = vld [vmem:[%s2603_s1 + $0x60] sm:$0xff] (!%p138_p2)   ;;  %v1990_v20 = vld [vmem:[%s2603_s1 + $0x68] sm:$0xff] (!%p138_p2)  }
   0xa   : > { %1707 = vmatprep.subr.bf16.mxu1 (!%p138_p2), %v1975_v5  ;;  %v1983_v13 = vld [vmem:[%s2603_s1 + $0xd8] sm:$0xff] (!%p138_p2)   ;;  %v1987_v17 = vld [vmem:[%s2603_s1 + $0xe0] sm:$0xff] (!%p138_p2)   ;;  %v1991_v21 = vld [vmem:[%s2603_s1 + $0xe8] sm:$0xff] (!%p138_p2)  }
   0xb   : > { %v1984_v14 = vld [vmem:[%s2603_s1 + $0x18] sm:$0xff] (!%p138_p2)   ;;  %v1988_v18 = vld [vmem:[%s2603_s1 + $0x20] sm:$0xff] (!%p138_p2)   ;;  %v1992_v22 = vld [vmem:[%s2603_s1 + $0x28] sm:$0xff] (!%p138_p2)  }
   0xc   : > { %1644 = vmatpush3.bf16.msra.mxu0 (!%p138_p2), %v1976_v6  ;;  %v1985_v15 = vld [vmem:[%s2603_s1 + $0x98] sm:$0xff] (!%p138_p2)   ;;  %v1989_v19 = vld [vmem:[%s2603_s1 + $0xa0] sm:$0xff] (!%p138_p2)   ;;  %v1993_v23 = vld [vmem:[%s2603_s1 + $0xa8] sm:$0xff] (!%p138_p2)  }
   0xd   : > { %1708 = vmatpush3.bf16.msra.mxu1 %v1977_v7  ;;  %1645 = vmatprep.subr.bf16.mxu0 %v1978_v8  ;;  %s2607_s13 = smov (!%p161_p3, %s1527_s13), 3  ;;  %v1994_v24 = vld [vmem:[%s2603_s1 + $0x70] sm:$0xff]   ;;  %v1998_v28 = vld [vmem:[%s2603_s1 + $0x78] sm:$0xff]   ;;  %v2009_v37 = vld [vmem:[%s2603_s1 + $0x140] sm:$0xff]  }
   0xe   : > { %1709 = vmatprep.subr.bf16.mxu1 %v1979_v9  ;;  %v1995_v25 = vld [vmem:[%s2603_s1 + $0xf0] sm:$0xff]   ;;  %s1961_s16 = smul.u32 240, %s2607_s13  ;;  %v1999_v29 = vld [vmem:[%s2603_s1 + $0xf8] sm:$0xff]   ;;  %v2010_v38 = vld [vmem:[%s2603_s1 + $0x1c0] sm:$0xff]  }
   0xf   : > { %v1996_v26 = vld [vmem:[%s2603_s1 + $0x30] sm:$0xff]   ;;  %v2000_v30 = vld [vmem:[%s2603_s1 + $0x38] sm:$0xff]   ;;  %v2011_v39 = vld [vmem:[%s2603_s1 + $0x100] sm:$0xff]  }
  0x10   : > { %1646 = vmatpush3.bf16.msra.mxu0 %v1980_v10  ;;  %v1997_v27 = vld [vmem:[%s2603_s1 + $0xb0] sm:$0xff]   ;;  %s2218_s27 = scalar_lea.vmem %s2602_s0, %s1961_s16  ;;  %v2001_v31 = vld [vmem:[%s2603_s1 + $0xb8] sm:$0xff]   ;;  %v2012_v40 = vld [vmem:[%s2603_s1 + $0x180] sm:$0xff]  }
  0x11   : > { %1710 = vmatpush3.bf16.msra.mxu1 %v1981_v11  ;;  %1647 = vmatprep.subr.bf16.mxu0 %v1982_v12  ;;  %v2002_v32 = vld [vmem:[%s2218_s27] ss:$12 sps:$4 sm:$0xff]   ;;  %v2004_v33 = vld [vmem:[%s2218_s27 + $0x4] ss:$12 sps:$4 sm:$0xff]   ;;  %v2230_v35 = vld [vmem:[%s2218_s27 + $0x1c] ss:$12 sps:$4 sm:$0xff]  }
  0x12   : > { %1711 = vmatprep.subr.bf16.mxu1 %v1983_v13  ;;  %v2005_v34 = vld [vmem:[%s2218_s27 + $0x18] ss:$12 sps:$4 sm:$0xff]   ;;  %987 = vmatprep.mubr.bf16.mxu0 %v2004_v33  ;;  %v2008_v36 = vld [vmem:[%s2218_s27 + $0x8] ss:$12 sps:$4 sm:$0xff]   ;;  %v2247_v41 = vld [vmem:[%s2218_s27 + $0x30] ss:$12 sps:$4 sm:$0xff]  }
  0x13   : > { %1084 = vmatprep.mubr.bf16.mxu1 %v2005_v34  ;;  %v2250_v42 = vld [vmem:[%s2218_s27 + $0x20] ss:$12 sps:$4 sm:$0xff]   ;;  %v2270_v48 = vld [vmem:[%s2218_s27 + $0x48] ss:$12 sps:$4 sm:$0xff]   ;;  %v2274_v49 = vld [vmem:[%s2218_s27 + $0x38] ss:$12 sps:$4 sm:$0xff]  }
  0x14   : > { %1648 = vmatpush3.bf16.msra.mxu0 %v1984_v14  ;;  %v2016_v43 = vld [vmem:[%s2603_s1 + $0x148] sm:$0xff]   ;;  %v2267_v47 = vld [vmem:[%s2218_s27 + $0x34] ss:$12 sps:$4 sm:$0xff]   ;;  %v2300_v56 = vld [vmem:[%s2218_s27 + $0x50] ss:$12 sps:$4 sm:$0xff]  }
  0x15   : > { %1712 = vmatpush3.bf16.msra.mxu1 %v1985_v15  ;;  %1649 = vmatprep.subr.bf16.mxu0 %v1986_v16  ;;  %v2017_v44 = vld [vmem:[%s2603_s1 + $0x1c8] sm:$0xff]   ;;  %v2024_v50 = vld [vmem:[%s2603_s1 + $0x150] sm:$0xff]   ;;  %v2032_v57 = vld [vmem:[%s2603_s1 + $0x158] sm:$0xff]  }
  0x16   : > { %1713 = vmatprep.subr.bf16.mxu1 %v1987_v17  ;;  %v2018_v45 = vld [vmem:[%s2603_s1 + $0x108] sm:$0xff]   ;;  %v2025_v51 = vld [vmem:[%s2603_s1 + $0x1d0] sm:$0xff]   ;;  %v2033_v58 = vld [vmem:[%s2603_s1 + $0x1d8] sm:$0xff]  }
  0x17   : > { %v2019_v46 = vld [vmem:[%s2603_s1 + $0x188] sm:$0xff]   ;;  %v2026_v52 = vld [vmem:[%s2603_s1 + $0x110] sm:$0xff]   ;;  %v2034_v59 = vld [vmem:[%s2603_s1 + $0x118] sm:$0xff]  }
  0x18   : > { %1650 = vmatpush3.bf16.msra.mxu0 %v1988_v18  ;;  %v2027_v53 = vld [vmem:[%s2603_s1 + $0x190] sm:$0xff]   ;;  %v2291_v54 = vld [vmem:[%s2218_s27 + $0x4c] ss:$12 sps:$4 sm:$0xff]   ;;  %v2040_v63 = vld [vmem:[%s2603_s1 + $0x160] sm:$0xff]  }
  0x19   : > { %1714 = vmatpush3.bf16.msra.mxu1 %v1989_v19  ;;  %1651 = vmatprep.subr.bf16.mxu0 %v1990_v20  ;;  %v2295_v55 = vld [vmem:[%s2218_s27 + $0x60] ss:$12 sps:$4 sm:$0xff]   ;;  %v2035_v60 = vld [vmem:[%s2603_s1 + $0x198] sm:$0xff]   ;;  %v2315_v61 = vld [vmem:[%s2218_s27 + $0x64] ss:$12 sps:$4 sm:$0xff]  }
  0x1a   : > { %1715 = vmatprep.subr.bf16.mxu1 %v1991_v21  ;;  %v2318_v62 = vld [vmem:[%s2218_s27 + $0x78] ss:$12 sps:$4 sm:$0xff]   ;;  %v2334_v2 = vld [vmem:[%s2218_s27 + $0x68] ss:$12 sps:$4 sm:$0xff]   ;;  %v2343_v5 = vld [vmem:[%s2218_s27 + $0x90] ss:$12 sps:$4 sm:$0xff]  }
  0x1b   : > { %v2041_v0 = vld [vmem:[%s2603_s1 + $0x1e0] sm:$0xff]   ;;  %v2340_v4 = vld [vmem:[%s2218_s27 + $0x7c] ss:$12 sps:$4 sm:$0xff]   ;;  %v2056_v13 = vld [vmem:[%s2603_s1 + $0x170] sm:$0xff]  }
  0x1c   : > { %1652 = vmatpush3.bf16.msra.mxu0 %v1992_v22  ;;  %v2042_v1 = vld [vmem:[%s2603_s1 + $0x120] sm:$0xff]   ;;  %v2048_v6 = vld [vmem:[%s2603_s1 + $0x168] sm:$0xff]   ;;  %v2057_v14 = vld [vmem:[%s2603_s1 + $0x1f0] sm:$0xff]  }
  0x1d   : > { %1716 = vmatpush3.bf16.msra.mxu1 %v1993_v23  ;;  %1653 = vmatprep.subr.bf16.mxu0 %v1994_v24  ;;  %v2043_v3 = vld [vmem:[%s2603_s1 + $0x1a0] sm:$0xff]   ;;  %v2049_v7 = vld [vmem:[%s2603_s1 + $0x1e8] sm:$0xff]   ;;  %v2058_v15 = vld [vmem:[%s2603_s1 + $0x130] sm:$0xff]  }
  0x1e   : > { %1717 = vmatprep.subr.bf16.mxu1 %v1995_v25  ;;  %v2050_v8 = vld [vmem:[%s2603_s1 + $0x128] sm:$0xff]   ;;  %v2365_v11 = vld [vmem:[%s2218_s27 + $0x94] ss:$12 sps:$4 sm:$0xff]   ;;  %v2387_v17 = vld [vmem:[%s2218_s27 + $0x98] ss:$12 sps:$4 sm:$0xff]  }
  0x1f   : > { %v2051_v9 = vld [vmem:[%s2603_s1 + $0x1a8] sm:$0xff]   ;;  %v2059_v16 = vld [vmem:[%s2603_s1 + $0x1b0] sm:$0xff]   ;;  %v2064_v20 = vld [vmem:[%s2603_s1 + $0x178] sm:$0xff]  }
  0x20   : > { %1654 = vmatpush3.bf16.msra.mxu0 %v1996_v26  ;;  %v2362_v10 = vld [vmem:[%s2218_s27 + $0x80] ss:$12 sps:$4 sm:$0xff]   ;;  %v2368_v12 = vld [vmem:[%s2218_s27 + $0xa8] ss:$12 sps:$4 sm:$0xff]   ;;  %v2065_v21 = vld [vmem:[%s2603_s1 + $0x1f8] sm:$0xff]  }
  0x21   : > { %1718 = vmatpush3.bf16.msra.mxu1 %v1997_v27  ;;  %1655 = vmatprep.subr.bf16.mxu0 %v1998_v28  ;;  %v2390_v18 = vld [vmem:[%s2218_s27 + $0xac] ss:$12 sps:$4 sm:$0xff]   ;;  %v2068_v24 = vld [vmem:[%s2603_s1 + $0x200] sm:$0xff]   ;;  %v2415_v25 = vld [vmem:[%s2218_s27 + $0xb0] ss:$12 sps:$4 sm:$0xff]  }
  0x22   : > { %1719 = vmatprep.subr.bf16.mxu1 %v1999_v29  ;;  %v2393_v19 = vld [vmem:[%s2218_s27 + $0xc0] ss:$12 sps:$4 sm:$0xff]   ;;  %v2066_v22 = vld [vmem:[%s2603_s1 + $0x138] sm:$0xff]   ;;  %v2070_v27 = vld [vmem:[%s2603_s1 + $0x210] sm:$0xff]  }
  0x23   : > { %v2067_v23 = vld [vmem:[%s2603_s1 + $0x1b8] sm:$0xff]   ;;  %v2069_v26 = vld [vmem:[%s2603_s1 + $0x208] sm:$0xff]   ;;  %v2072_v29 = vld [vmem:[%s2603_s1 + $0x220] sm:$0xff]  }
  0x24   : > { %1656 = vmatpush3.bf16.msra.mxu0 %v2000_v30  ;;  %v2071_v28 = vld [vmem:[%s2603_s1 + $0x218] sm:$0xff]   ;;  %v2073_v30 = vld [vmem:[%s2603_s1 + $0x228] sm:$0xff]   ;;  %v2074_v33 = vld [vmem:[%s2218_s27 + $0xc4] ss:$12 sps:$4 sm:$0xff]  }
  0x25   : > { %1720 = vmatpush3.bf16.msra.mxu1 %v2001_v31  ;;  %1769 = vmatprep.subr.bf16.mxu0 %v2009_v37  ;;  %v2075_v31 = vld [vmem:[%s2603_s1 + $0x230] sm:$0xff]   ;;  %v2081_v37 = vld [vmem:[%s2218_s27 + $0xe0] ss:$12 sps:$4 sm:$0xff]  }
  0x26   : > { %1833 = vmatprep.subr.bf16.mxu1 %v2010_v38 }
  0x27   : > { %988 = vmatmul.mubr.bf16.vlgmr.msra.gmra.mrb[0].mxu0 %v2002_v32  ;;  %v2080_v32 = vld [vmem:[%s2603_s1 + $0x238] sm:$0xff]  }
  0x28   : > { %1085 = vmatmul.mubr.bf16.vlgmr.msra.gmra.mrb[0].mxu1 %v2008_v36  ;;  %995 = vmatprep.mubr.bf16.mxu0 %v2230_v35  ;;  %v2079_v36 = vld [vmem:[%s2218_s27 + $0xd8] ss:$12 sps:$4 sm:$0xff]  }
  0x29   : > { %1770 = vmatpush3.bf16.msra.mxu0 %v2011_v39  ;;  %1834 = vmatpush3.bf16.msra.mxu1 %v2012_v40  ;;  %v2481_v40 = vld [vmem:[%s2604_s2] ss:$0 sm:$0xff] }
  0x2a   : > { %1092 = vmatprep.mubr.bf16.mxu1 %v2247_v41  ;;  %1771 = vmatprep.subr.bf16.mxu0 %v2016_v43 }
  0x2b   : > { %1835 = vmatprep.subr.bf16.mxu1 %v2017_v44 }
  0x2d   : > { %1772 = vmatpush3.bf16.msra.mxu0 %v2018_v45  ;;  %1836 = vmatpush3.bf16.msra.mxu1 %v2019_v46 }
  0x2e   : > { %1773 = vmatprep.subr.bf16.mxu0 %v2024_v50  ;;  %1837 = vmatprep.subr.bf16.mxu1 %v2025_v51 }
  0x2f   : > { %996 = vmatmul.mubr.bf16.gmra.mrb[4].mxu0 %v2005_v34  ;;  %v2076_v34 = vld [vmem:[%s2218_s27 + $0xc8] ss:$12 sps:$4 sm:$0xff]  }
  0x30   : > { %1093 = vmatmul.mubr.bf16.gmra.mrb[4].mxu1 %v2250_v42  ;;  %1003 = vmatprep.mubr.bf16.mxu0 %v2267_v47 }
  0x31   : > { %1100 = vmatprep.mubr.bf16.mxu1 %v2270_v48  ;;  %1774 = vmatpush3.bf16.msra.mxu0 %v2026_v52 }
  0x32   : > { %1838 = vmatpush3.bf16.msra.mxu1 %v2027_v53  ;;  %1775 = vmatprep.subr.bf16.mxu0 %v2032_v57 }
  0x33   : > { %1839 = vmatprep.subr.bf16.mxu1 %v2033_v58 }
  0x35   : > { %1776 = vmatpush3.bf16.msra.mxu0 %v2034_v59 }
  0x36   : > { %1840 = vmatpush3.bf16.msra.mxu1 %v2035_v60  ;;  %1777 = vmatprep.subr.bf16.mxu0 %v2040_v63 }
  0x37   : > { %1004 = vmatmul.mubr.bf16.gmra.mrb[8].mxu0 %v2247_v41  ;;  %1841 = vmatprep.subr.bf16.mxu1 %v2041_v0 }
  0x38   : > { %1101 = vmatmul.mubr.bf16.gmra.mrb[8].mxu1 %v2274_v49  ;;  %1011 = vmatprep.mubr.bf16.mxu0 %v2291_v54 }
  0x39   : > { %1108 = vmatprep.mubr.bf16.mxu1 %v2295_v55  ;;  %1778 = vmatpush3.bf16.msra.mxu0 %v2042_v1 }
  0x3a   : > { %1842 = vmatpush3.bf16.msra.mxu1 %v2043_v3  ;;  %1779 = vmatprep.subr.bf16.mxu0 %v2048_v6 }
  0x3b   : > { %1843 = vmatprep.subr.bf16.mxu1 %v2049_v7 }
  0x3d   : > { %1780 = vmatpush3.bf16.msra.mxu0 %v2050_v8 }
  0x3e   : > { %1844 = vmatpush3.bf16.msra.mxu1 %v2051_v9  ;;  %1781 = vmatprep.subr.bf16.mxu0 %v2056_v13 }
  0x3f   : > { %1012 = vmatmul.mubr.bf16.gmra.mrb[12].mxu0 %v2270_v48  ;;  %1845 = vmatprep.subr.bf16.mxu1 %v2057_v14 }
  0x40   : > { %1109 = vmatmul.mubr.bf16.gmra.mrb[12].mxu1 %v2300_v56  ;;  %1019 = vmatprep.mubr.bf16.mxu0 %v2315_v61 }
  0x41   : > { %1116 = vmatprep.mubr.bf16.mxu1 %v2318_v62  ;;  %1782 = vmatpush3.bf16.msra.mxu0 %v2058_v15 }
  0x42   : > { %1846 = vmatpush3.bf16.msra.mxu1 %v2059_v16  ;;  %1783 = vmatprep.subr.bf16.mxu0 %v2064_v20 }
  0x43   : > { %1847 = vmatprep.subr.bf16.mxu1 %v2065_v21 }
  0x45   : > { %1784 = vmatpush3.bf16.msra.mxu0 %v2066_v22 }
  0x46   : > { %1848 = vmatpush3.bf16.msra.mxu1 %v2067_v23  ;;  %1913 = vmatprep.subr.bf16.mxu0 %v2068_v24 }
  0x47   : > { %1020 = vmatmul.mubr.bf16.gmra.mrb[16].mxu0 %v2295_v55  ;;  %1945 = vmatprep.subr.bf16.mxu1 %v2068_v24 }
  0x48   : > { %1117 = vmatmul.mubr.bf16.gmra.mrb[16].mxu1 %v2334_v2  ;;  %1027 = vmatprep.mubr.bf16.mxu0 %v2340_v4 }
  0x49   : > { %1124 = vmatprep.mubr.bf16.mxu1 %v2343_v5 }
  0x4f   : > { %1028 = vmatmul.mubr.bf16.gmra.mrb[20].mxu0 %v2318_v62 }
  0x50   : > { %1125 = vmatmul.mubr.bf16.gmra.mrb[20].mxu1 %v2362_v10  ;;  %1035 = vmatprep.mubr.bf16.mxu0 %v2365_v11 }
  0x51   : > { %1132 = vmatprep.mubr.bf16.mxu1 %v2368_v12 }
  0x57   : > { %1036 = vmatmul.mubr.bf16.gmra.mrb[24].mxu0 %v2343_v5 }
  0x58   : > { %1133 = vmatmul.mubr.bf16.gmra.mrb[24].mxu1 %v2387_v17  ;;  %1043 = vmatprep.mubr.bf16.mxu0 %v2390_v18 }
  0x59   : > { %1140 = vmatprep.mubr.bf16.mxu1 %v2393_v19 }
  0x5f   : > { %1044 = vmatmul.mubr.bf16.gmra.mrb[28].mxu0 %v2368_v12 }
  0x60   : > { %1141 = vmatmul.mubr.bf16.gmra.mrb[28].mxu1 %v2415_v25  ;;  %1181 = vmatprep.mubr.bf16.mxu0 %v2250_v42 }
  0x61   : > { %1278 = vmatprep.mubr.bf16.mxu1 %v2267_v47 }
  0x67   : > { %1182 = vmatmul.mubr.bf16.vlgmr.msra.gmra.mrb[32].mxu0 %v2230_v35  ;;  %v2077_v35 = vld [vmem:[%s2218_s27 + $0xdc] ss:$12 sps:$4 sm:$0xff]   ;;  %s1640_s27 = sshll.u32 %s2607_s13, 7 }
  0x68   : > { %1279 = vmatmul.mubr.bf16.vlgmr.msra.gmra.mrb[32].mxu1 %v2247_v41  ;;  %1914 = vmatpush3.bf16.msra.mxu0 %v2068_v24  ;;  %s2572_s19 = scalar_lea.vmem %s2605_s3, %s1640_s27 }
  0x69   : > { %1953 = vmatpush3.bf16.msra.mxu1 %v2068_v24  ;;  %1189 = vmatprep.mubr.bf16.mxu0 %v2274_v49 }
  0x6a   : > { %1286 = vmatprep.mubr.bf16.mxu1 %v2291_v54  ;;  %1915 = vmatprep.subr.bf16.mxu0 %v2069_v26 }
  0x6b   : > { %1946 = vmatprep.subr.bf16.mxu1 %v2069_v26 }
  0x6c   : > { %1916 = vmatpush3.bf16.msra.mxu0 %v2069_v26 }
  0x6d   : > { %1954 = vmatpush3.bf16.msra.mxu1 %v2069_v26  ;;  %1917 = vmatprep.subr.bf16.mxu0 %v2070_v27 }
  0x6e   : > { %1947 = vmatprep.subr.bf16.mxu1 %v2070_v27 }
  0x6f   : > { %1190 = vmatmul.mubr.bf16.gmra.mrb[36].mxu0 %v2267_v47 }
  0x70   : > { %1287 = vmatmul.mubr.bf16.gmra.mrb[36].mxu1 %v2270_v48  ;;  %1197 = vmatprep.mubr.bf16.mxu0 %v2300_v56 }
  0x71   : > { %1294 = vmatprep.mubr.bf16.mxu1 %v2315_v61  ;;  %1918 = vmatpush3.bf16.msra.mxu0 %v2070_v27 }
  0x72   : > { %1955 = vmatpush3.bf16.msra.mxu1 %v2070_v27  ;;  %1919 = vmatprep.subr.bf16.mxu0 %v2071_v28 }
  0x73   : > { %1948 = vmatprep.subr.bf16.mxu1 %v2071_v28 }
  0x75   : > { %1920 = vmatpush3.bf16.msra.mxu0 %v2071_v28 }
  0x76   : > { %1956 = vmatpush3.bf16.msra.mxu1 %v2071_v28  ;;  %1921 = vmatprep.subr.bf16.mxu0 %v2072_v29 }
  0x77   : > { %1198 = vmatmul.mubr.bf16.gmra.mrb[40].mxu0 %v2291_v54  ;;  %1949 = vmatprep.subr.bf16.mxu1 %v2072_v29 }
  0x78   : > { %1295 = vmatmul.mubr.bf16.gmra.mrb[40].mxu1 %v2295_v55  ;;  %1205 = vmatprep.mubr.bf16.mxu0 %v2334_v2 }
  0x79   : > { %1302 = vmatprep.mubr.bf16.mxu1 %v2340_v4  ;;  %1922 = vmatpush3.bf16.msra.mxu0 %v2072_v29 }
  0x7a   : > { %1957 = vmatpush3.bf16.msra.mxu1 %v2072_v29  ;;  %1923 = vmatprep.subr.bf16.mxu0 %v2073_v30 }
  0x7b   : > { %1950 = vmatprep.subr.bf16.mxu1 %v2073_v30 }
  0x7d   : > { %1924 = vmatpush3.bf16.msra.mxu0 %v2073_v30 }
  0x7e   : > { %1958 = vmatpush3.bf16.msra.mxu1 %v2073_v30  ;;  %1925 = vmatprep.subr.bf16.mxu0 %v2075_v31 }
  0x7f   : > { %1206 = vmatmul.mubr.bf16.gmra.mrb[44].mxu0 %v2315_v61  ;;  %1951 = vmatprep.subr.bf16.mxu1 %v2075_v31 }
  0x80   : > { %1303 = vmatmul.mubr.bf16.gmra.mrb[44].mxu1 %v2318_v62  ;;  %1213 = vmatprep.mubr.bf16.mxu0 %v2362_v10 }
  0x81   : > { %1310 = vmatprep.mubr.bf16.mxu1 %v2365_v11  ;;  %1926 = vmatpush3.bf16.msra.mxu0 %v2075_v31 }
  0x82   : > { %1959 = vmatpush3.bf16.msra.mxu1 %v2075_v31  ;;  %1927 = vmatprep.subr.bf16.mxu0 %v2080_v32 }
  0x83   : > { %1952 = vmatprep.subr.bf16.mxu1 %v2080_v32 }
  0x85   : > { %1928 = vmatpush3.bf16.msra.mxu0 %v2080_v32 }
  0x86   : > { %1960 = vmatpush3.bf16.msra.mxu1 %v2080_v32 }
  0x87   : > { %1214 = vmatmul.mubr.bf16.gmra.mrb[48].mxu0 %v2340_v4 }
  0x88   : > { %1311 = vmatmul.mubr.bf16.gmra.mrb[48].mxu1 %v2343_v5  ;;  %1221 = vmatprep.mubr.bf16.mxu0 %v2387_v17 }
  0x89   : > { %1318 = vmatprep.mubr.bf16.mxu1 %v2390_v18 }
  0x8f   : > { %1222 = vmatmul.mubr.bf16.gmra.mrb[52].mxu0 %v2365_v11 }
  0x90   : > { %1319 = vmatmul.mubr.bf16.gmra.mrb[52].mxu1 %v2368_v12  ;;  %1229 = vmatprep.mubr.bf16.mxu0 %v2415_v25 }
  0x91   : > { %1326 = vmatprep.mubr.bf16.mxu1 %v2074_v33 }
  0x97   : > { %1230 = vmatmul.mubr.bf16.gmra.mrb[56].mxu0 %v2390_v18 }
  0x98   : > { %1327 = vmatmul.mubr.bf16.gmra.mrb[56].mxu1 %v2393_v19  ;;  %1237 = vmatprep.mubr.bf16.mxu0 %v2076_v34 }
  0x99   : > { %1334 = vmatprep.mubr.bf16.mxu1 %v2077_v35 }
  0x9f   : > { %1238 = vmatmul.mubr.bf16.gmra.mrb[60].mxu0 %v2074_v33 }
  0xa0   : > { %1335 = vmatmul.mubr.bf16.gmra.mrb[60].mxu1 %v2079_v36  ;;  %1929 = vmatprep.mubr.bf16.mxu0 %v2274_v49 }
  0xa1   : > { %1937 = vmatprep.mubr.bf16.mxu1 %v2387_v17 }
  0xa7   : > { %1930 = vmatmul.mubr.bf16.vlgmr.msra.gmra.mrb[64].mxu0 %v2300_v56 }
  0xa8   : > { %1938 = vmatmul.mubr.bf16.vlgmr.msra.gmra.mrb[64].mxu1 %v2415_v25  ;;  %1933 = vmatprep.mubr.bf16.mxu0 %v2334_v2 }
  0xa9   : > { %1941 = vmatprep.mubr.bf16.mxu1 %v2076_v34 }
  0xaf   : > { %1934 = vmatmul.mubr.bf16.gmra.mrb[68].mxu0 %v2362_v10 }
  0xb0   : > { %1942 = vmatmul.mubr.bf16.gmra.mrb[68].mxu1 %v2081_v37 }
  0xfa   : > { %v1657_v38 = vpop.f32.mrb[0].mxu0 }
  0xfb   : > { %v1721_v39 = vpop.f32.mrb[0].mxu1  ;;  %v1658_v41 = vpop.f32.mrb[1].mxu0 }
  0xfc   : > { %v1659_v42 = vadd.f32 %v1658_v41, %v1657_v38  ;;  %v1722_v43 = vpop.f32.mrb[1].mxu1  ;;  %v1660_v44 = vpop.f32.mrb[2].mxu0 }
  0xfd   : > { %v1723_v45 = vadd.f32 %v1722_v43, %v1721_v39  ;;  %v1724_v46 = vpop.f32.mrb[2].mxu1  ;;  %v1661_v47 = vpop.f32.mrb[3].mxu0 }
  0xfe   : > { %v990_v48 = vadd.f32 %v1659_v42, %v2481_v40  ;;  %v1662_v49 = vadd.f32 %v1661_v47, %v1660_v44  ;;  %v1725_v50 = vpop.f32.mrb[3].mxu1 }
  0xff   : > { %v1726_v51 = vadd.f32 %v1725_v50, %v1724_v46 }
 0x100   : > { %v2484_v52 = vadd.f32 %v1723_v45, %v990_v48  ;;  %v993_v53 = vadd.f32 %v1662_v49, %v2481_v40 }
 0x102   : > { %v2487_v54 = vadd.f32 %v1726_v51, %v993_v53  ;;  %v1663_v55 = vpop.f32.mrb[4].mxu0 }
 0x103   : > { %v1727_v56 = vpop.f32.mrb[4].mxu1  ;;  %v1664_v57 = vpop.f32.mrb[5].mxu0 }
 0x104   : > { %v1665_v58 = vadd.f32 %v1664_v57, %v1663_v55  ;;  %v1728_v59 = vpop.f32.mrb[5].mxu1  ;;  %v1666_v60 = vpop.f32.mrb[6].mxu0 }
 0x105   : > { %v1729_v61 = vadd.f32 %v1728_v59, %v1727_v56  ;;  %v1730_v62 = vpop.f32.mrb[6].mxu1  ;;  %v1667_v63 = vpop.f32.mrb[7].mxu0 }
 0x106   : > { %v998_v0 = vadd.f32 %v1665_v58, %v2481_v40  ;;  %v1668_v1 = vadd.f32 %v1667_v63, %v1666_v60  ;;  %v1731_v2 = vpop.f32.mrb[7].mxu1 }
 0x107   : > { %v1732_v3 = vadd.f32 %v1731_v2, %v1730_v62 }
 0x108   : > { %v2490_v4 = vadd.f32 %v1729_v61, %v998_v0  ;;  %v1001_v5 = vadd.f32 %v1668_v1, %v2481_v40 }
 0x10a   : > { %v2493_v6 = vadd.f32 %v1732_v3, %v1001_v5  ;;  %v1669_v7 = vpop.f32.mrb[8].mxu0 }
 0x10b   : > { %v1733_v8 = vpop.f32.mrb[8].mxu1  ;;  %v1670_v9 = vpop.f32.mrb[9].mxu0 }
 0x10c   : > { %v1671_v10 = vadd.f32 %v1670_v9, %v1669_v7  ;;  %v1734_v11 = vpop.f32.mrb[9].mxu1  ;;  %v1672_v12 = vpop.f32.mrb[10].mxu0 }
 0x10d   : > { %v1735_v13 = vadd.f32 %v1734_v11, %v1733_v8  ;;  %v1736_v14 = vpop.f32.mrb[10].mxu1  ;;  %v1673_v15 = vpop.f32.mrb[11].mxu0 }
 0x10e   : > { %v1006_v16 = vadd.f32 %v1671_v10, %v2481_v40  ;;  %v1674_v17 = vadd.f32 %v1673_v15, %v1672_v12  ;;  %v1737_v18 = vpop.f32.mrb[11].mxu1 }
 0x10f   : > { %v1738_v19 = vadd.f32 %v1737_v18, %v1736_v14 }
 0x110   : > { %v2496_v20 = vadd.f32 %v1735_v13, %v1006_v16  ;;  %v1009_v21 = vadd.f32 %v1674_v17, %v2481_v40 }
 0x112   : > { %v2499_v22 = vadd.f32 %v1738_v19, %v1009_v21  ;;  %v1675_v23 = vpop.f32.mrb[12].mxu0 }
 0x113   : > { %v1739_v24 = vpop.f32.mrb[12].mxu1  ;;  %v1676_v25 = vpop.f32.mrb[13].mxu0 }
 0x114   : > { %v1677_v26 = vadd.f32 %v1676_v25, %v1675_v23  ;;  %v1740_v27 = vpop.f32.mrb[13].mxu1  ;;  %v1678_v28 = vpop.f32.mrb[14].mxu0 }
 0x115   : > { %v1741_v29 = vadd.f32 %v1740_v27, %v1739_v24  ;;  %v1742_v30 = vpop.f32.mrb[14].mxu1  ;;  %v1679_v31 = vpop.f32.mrb[15].mxu0 }
 0x116   : > { %v1014_v32 = vadd.f32 %v1677_v26, %v2481_v40  ;;  %v1680_v33 = vadd.f32 %v1679_v31, %v1678_v28  ;;  %v1743_v34 = vpop.f32.mrb[15].mxu1 }
 0x117   : > { %v1744_v35 = vadd.f32 %v1743_v34, %v1742_v30 }
 0x118   : > { %v2502_v36 = vadd.f32 %v1741_v29, %v1014_v32  ;;  %v1017_v37 = vadd.f32 %v1680_v33, %v2481_v40 }
 0x11a   : > { %v2505_v38 = vadd.f32 %v1744_v35, %v1017_v37  ;;  %v1681_v39 = vpop.f32.mrb[16].mxu0 }
 0x11b   : > { %v1745_v41 = vpop.f32.mrb[16].mxu1  ;;  %v1682_v42 = vpop.f32.mrb[17].mxu0 }
 0x11c   : > { %v1683_v43 = vadd.f32 %v1682_v42, %v1681_v39  ;;  %v1746_v44 = vpop.f32.mrb[17].mxu1  ;;  %v1684_v45 = vpop.f32.mrb[18].mxu0 }
 0x11d   : > { %v1747_v46 = vadd.f32 %v1746_v44, %v1745_v41  ;;  %v1748_v47 = vpop.f32.mrb[18].mxu1  ;;  %v1685_v48 = vpop.f32.mrb[19].mxu0 }
 0x11e   : > { %v1022_v49 = vadd.f32 %v1683_v43, %v2481_v40  ;;  %v1686_v50 = vadd.f32 %v1685_v48, %v1684_v45  ;;  %v1749_v51 = vpop.f32.mrb[19].mxu1 }
 0x11f   : > { %v1750_v53 = vadd.f32 %v1749_v51, %v1748_v47 }
 0x120   : > { %v2508_v55 = vadd.f32 %v1747_v46, %v1022_v49  ;;  %v1025_v56 = vadd.f32 %v1686_v50, %v2481_v40 }
 0x122   : > { %v2511_v57 = vadd.f32 %v1750_v53, %v1025_v56  ;;  %v1687_v58 = vpop.f32.mrb[20].mxu0 }
 0x123   : > { %v1751_v59 = vpop.f32.mrb[20].mxu1  ;;  %v1688_v60 = vpop.f32.mrb[21].mxu0 }
 0x124   : > { %v1689_v61 = vadd.f32 %v1688_v60, %v1687_v58  ;;  %v1752_v62 = vpop.f32.mrb[21].mxu1  ;;  %v1690_v63 = vpop.f32.mrb[22].mxu0 }
 0x125   : > { %v1753_v0 = vadd.f32 %v1752_v62, %v1751_v59  ;;  %v1754_v1 = vpop.f32.mrb[22].mxu1  ;;  %v1691_v2 = vpop.f32.mrb[23].mxu0 }
 0x126   : > { %v1030_v3 = vadd.f32 %v1689_v61, %v2481_v40  ;;  %v1692_v5 = vadd.f32 %v1691_v2, %v1690_v63  ;;  %v1755_v7 = vpop.f32.mrb[23].mxu1 }
 0x127   : > { %v1756_v8 = vadd.f32 %v1755_v7, %v1754_v1 }
 0x128   : > { %v2514_v9 = vadd.f32 %v1753_v0, %v1030_v3  ;;  %v1033_v10 = vadd.f32 %v1692_v5, %v2481_v40 }
 0x12a   : > { %v2517_v11 = vadd.f32 %v1756_v8, %v1033_v10  ;;  %v1693_v12 = vpop.f32.mrb[24].mxu0 }
 0x12b   : > { %v1757_v13 = vpop.f32.mrb[24].mxu1  ;;  %v1694_v14 = vpop.f32.mrb[25].mxu0 }
 0x12c   : > { %v1695_v15 = vadd.f32 %v1694_v14, %v1693_v12  ;;  %v1758_v16 = vpop.f32.mrb[25].mxu1  ;;  %v1696_v17 = vpop.f32.mrb[26].mxu0 }
 0x12d   : > { %v1759_v18 = vadd.f32 %v1758_v16, %v1757_v13  ;;  %v1760_v19 = vpop.f32.mrb[26].mxu1  ;;  %v1697_v21 = vpop.f32.mrb[27].mxu0 }
 0x12e   : > { %v1038_v23 = vadd.f32 %v1695_v15, %v2481_v40  ;;  %v1698_v24 = vadd.f32 %v1697_v21, %v1696_v17  ;;  %v1761_v25 = vpop.f32.mrb[27].mxu1 }
 0x12f   : > { %v1762_v26 = vadd.f32 %v1761_v25, %v1760_v19 }
 0x130   : > { %v2520_v27 = vadd.f32 %v1759_v18, %v1038_v23  ;;  %v1041_v28 = vadd.f32 %v1698_v24, %v2481_v40 }
 0x132   : > { %v2523_v29 = vadd.f32 %v1762_v26, %v1041_v28  ;;  %v1699_v30 = vpop.f32.mrb[28].mxu0 }
 0x133   : > { %v1763_v31 = vpop.f32.mrb[28].mxu1  ;;  %v1700_v32 = vpop.f32.mrb[29].mxu0 }
 0x134   : > { %v1701_v33 = vadd.f32 %v1700_v32, %v1699_v30  ;;  %v1764_v34 = vpop.f32.mrb[29].mxu1  ;;  %v1702_v35 = vpop.f32.mrb[30].mxu0 }
 0x135   : > { %v1765_v37 = vadd.f32 %v1764_v34, %v1763_v31  ;;  %v1766_v39 = vpop.f32.mrb[30].mxu1  ;;  %v1703_v41 = vpop.f32.mrb[31].mxu0 }
 0x136   : > { %v1046_v42 = vadd.f32 %v1701_v33, %v2481_v40  ;;  %v1704_v43 = vadd.f32 %v1703_v41, %v1702_v35  ;;  %v1767_v44 = vpop.f32.mrb[31].mxu1 }
 0x137   : > { %v1768_v45 = vadd.f32 %v1767_v44, %v1766_v39 }
 0x138   : > { %v2526_v46 = vadd.f32 %v1765_v37, %v1046_v42  ;;  %v1049_v47 = vadd.f32 %v1704_v43, %v2481_v40 }
 0x13a   : > { %v2529_v48 = vadd.f32 %v1768_v45, %v1049_v47  ;;  %v1785_v49 = vpop.f32.mrb[32].mxu0 }
 0x13b   : > { %v1849_v50 = vpop.f32.mrb[32].mxu1  ;;  %v1786_v51 = vpop.f32.mrb[33].mxu0 }
 0x13c   : > { %v1787_v53 = vadd.f32 %v1786_v51, %v1785_v49  ;;  %v1850_v56 = vpop.f32.mrb[33].mxu1  ;;  %v1788_v58 = vpop.f32.mrb[34].mxu0 }
 0x13d   : > { %v1851_v59 = vadd.f32 %v1850_v56, %v1849_v50  ;;  %v1852_v60 = vpop.f32.mrb[34].mxu1  ;;  %v1789_v61 = vpop.f32.mrb[35].mxu0 }
 0x13e   : > { %v1184_v62 = vadd.f32 %v1787_v53, %v2484_v52  ;;  %v1790_v63 = vadd.f32 %v1789_v61, %v1788_v58  ;;  %v1853_v0 = vpop.f32.mrb[35].mxu1 }
 0x13f   : > { %v1854_v1 = vadd.f32 %v1853_v0, %v1852_v60 }
 0x140   : > { %v1187_v2 = vadd.f32 %v1790_v63, %v2487_v54  ;;  %v2533_v3 = vadd.f32 %v1851_v59, %v1184_v62 }
 0x142   : > { %v1791_v40 = vpop.f32.mrb[36].mxu0  ;;  %v2535_v5 = vadd.f32 %v1854_v1, %v1187_v2 }
 0x143   : > { %v1855_v7 = vpop.f32.mrb[36].mxu1  ;;  %v1792_v8 = vpop.f32.mrb[37].mxu0 }
 0x144   : > { %v1793_v10 = vadd.f32 %v1792_v8, %v1791_v40  ;;  %v1856_v12 = vpop.f32.mrb[37].mxu1  ;;  %v1794_v13 = vpop.f32.mrb[38].mxu0 }
 0x145   : > { %v1857_v14 = vadd.f32 %v1856_v12, %v1855_v7  ;;  %v1858_v15 = vpop.f32.mrb[38].mxu1  ;;  %v1795_v16 = vpop.f32.mrb[39].mxu0 }
 0x146   : > { %v1192_v52 = vadd.f32 %v1793_v10, %v2490_v4  ;;  %v1796_v17 = vadd.f32 %v1795_v16, %v1794_v13  ;;  %v1859_v18 = vpop.f32.mrb[39].mxu1 }
 0x147   : > { %v1860_v19 = vadd.f32 %v1859_v18, %v1858_v15 }
 0x148   : > { %v1195_v54 = vadd.f32 %v1796_v17, %v2493_v6  ;;  %v2539_v21 = vadd.f32 %v1857_v14, %v1192_v52 }
 0x14a   : > { %v1797_v23 = vpop.f32.mrb[40].mxu0  ;;  %v2541_v24 = vadd.f32 %v1860_v19, %v1195_v54 }
 0x14b   : > { %v1861_v25 = vpop.f32.mrb[40].mxu1  ;;  %v1798_v26 = vpop.f32.mrb[41].mxu0 }
 0x14c   : > { %v1799_v28 = vadd.f32 %v1798_v26, %v1797_v23  ;;  %v1862_v30 = vpop.f32.mrb[41].mxu1  ;;  %v1800_v31 = vpop.f32.mrb[42].mxu0 }
 0x14d   : > { %v1863_v32 = vadd.f32 %v1862_v30, %v1861_v25  ;;  %v1864_v33 = vpop.f32.mrb[42].mxu1  ;;  %v1801_v34 = vpop.f32.mrb[43].mxu0 }
 0x14e   : > { %v1200_v4 = vadd.f32 %v1799_v28, %v2496_v20  ;;  %v1802_v35 = vadd.f32 %v1801_v34, %v1800_v31  ;;  %v1865_v37 = vpop.f32.mrb[43].mxu1 }
 0x14f   : > { %v1866_v39 = vadd.f32 %v1865_v37, %v1864_v33 }
 0x150   : > { %v1203_v6 = vadd.f32 %v1802_v35, %v2499_v22  ;;  %v2545_v41 = vadd.f32 %v1863_v32, %v1200_v4 }
 0x152   : > { %v1803_v42 = vpop.f32.mrb[44].mxu0  ;;  %v2547_v43 = vadd.f32 %v1866_v39, %v1203_v6 }
 0x153   : > { %v1867_v44 = vpop.f32.mrb[44].mxu1  ;;  %v1804_v45 = vpop.f32.mrb[45].mxu0 }
 0x154   : > { %v1805_v47 = vadd.f32 %v1804_v45, %v1803_v42  ;;  %v1868_v49 = vpop.f32.mrb[45].mxu1  ;;  %v1806_v50 = vpop.f32.mrb[46].mxu0 }
 0x155   : > { %v1869_v51 = vadd.f32 %v1868_v49, %v1867_v44  ;;  %v1870_v53 = vpop.f32.mrb[46].mxu1  ;;  %v1807_v56 = vpop.f32.mrb[47].mxu0 }
 0x156   : > { %v1208_v20 = vadd.f32 %v1805_v47, %v2502_v36  ;;  %v1808_v58 = vadd.f32 %v1807_v56, %v1806_v50  ;;  %v1871_v59 = vpop.f32.mrb[47].mxu1 }
 0x157   : > { %v1872_v60 = vadd.f32 %v1871_v59, %v1870_v53 }
 0x158   : > { %v1211_v22 = vadd.f32 %v1808_v58, %v2505_v38  ;;  %v2551_v61 = vadd.f32 %v1869_v51, %v1208_v20 }
 0x15a   : > { %v1809_v62 = vpop.f32.mrb[48].mxu0  ;;  %v2553_v63 = vadd.f32 %v1872_v60, %v1211_v22 }
 0x15b   : > { %v1873_v0 = vpop.f32.mrb[48].mxu1  ;;  %v1810_v1 = vpop.f32.mrb[49].mxu0 }
 0x15c   : > { %v1811_v2 = vadd.f32 %v1810_v1, %v1809_v62  ;;  %v1874_v40 = vpop.f32.mrb[49].mxu1  ;;  %v1812_v7 = vpop.f32.mrb[50].mxu0 }
 0x15d   : > { %v1875_v8 = vadd.f32 %v1874_v40, %v1873_v0  ;;  %v1876_v10 = vpop.f32.mrb[50].mxu1  ;;  %v1813_v12 = vpop.f32.mrb[51].mxu0 }
 0x15e   : > { %v1216_v36 = vadd.f32 %v1811_v2, %v2508_v55  ;;  %v1814_v13 = vadd.f32 %v1813_v12, %v1812_v7  ;;  %v1877_v14 = vpop.f32.mrb[51].mxu1 }
 0x15f   : > { %v1878_v15 = vadd.f32 %v1877_v14, %v1876_v10 }
 0x160   : > { %v1219_v38 = vadd.f32 %v1814_v13, %v2511_v57  ;;  %v1313_v16 = vadd.f32 %v1875_v8, %v1216_v36 }
 0x162   : > { %v1815_v52 = vpop.f32.mrb[52].mxu0  ;;  %v2557_v17 = vadd.f32 %v1878_v15, %v1219_v38 }
 0x163   : > { %v1879_v18 = vpop.f32.mrb[52].mxu1  ;;  %v1816_v19 = vpop.f32.mrb[53].mxu0 }
 0x164   : > { %v1817_v54 = vadd.f32 %v1816_v19, %v1815_v52  ;;  %v1880_v23 = vpop.f32.mrb[53].mxu1  ;;  %v1818_v25 = vpop.f32.mrb[54].mxu0 }
 0x165   : > { %v1881_v26 = vadd.f32 %v1880_v23, %v1879_v18  ;;  %v1882_v28 = vpop.f32.mrb[54].mxu1  ;;  %v1819_v30 = vpop.f32.mrb[55].mxu0 }
 0x166   : > { %v1224_v31 = vadd.f32 %v1817_v54, %v2514_v9  ;;  %v1820_v55 = vadd.f32 %v1819_v30, %v1818_v25  ;;  %v1883_v32 = vpop.f32.mrb[55].mxu1 }
 0x167   : > { %v1884_v33 = vadd.f32 %v1883_v32, %v1882_v28 }
 0x168   : > { %v1227_v34 = vadd.f32 %v1820_v55, %v2517_v11  ;;  %v1321_v57 = vadd.f32 %v1881_v26, %v1224_v31 }
 0x16a   : > { %v1821_v4 = vpop.f32.mrb[56].mxu0  ;;  %v1324_v35 = vadd.f32 %v1884_v33, %v1227_v34 }
 0x16b   : > { %v1885_v37 = vpop.f32.mrb[56].mxu1  ;;  %v1822_v39 = vpop.f32.mrb[57].mxu0 }
 0x16c   : > { %v1823_v6 = vadd.f32 %v1822_v39, %v1821_v4  ;;  %v1886_v42 = vpop.f32.mrb[57].mxu1  ;;  %v1824_v44 = vpop.f32.mrb[58].mxu0 }
 0x16d   : > { %v1887_v45 = vadd.f32 %v1886_v42, %v1885_v37  ;;  %v1888_v47 = vpop.f32.mrb[58].mxu1  ;;  %v1825_v49 = vpop.f32.mrb[59].mxu0 }
 0x16e   : > { %v1232_v50 = vadd.f32 %v1823_v6, %v2520_v27  ;;  %v1826_v51 = vadd.f32 %v1825_v49, %v1824_v44  ;;  %v1889_v9 = vpop.f32.mrb[59].mxu1 }
 0x16f   : > { %v1890_v53 = vadd.f32 %v1889_v9, %v1888_v47 }
 0x170   : > { %v1235_v56 = vadd.f32 %v1826_v51, %v2523_v29  ;;  %v1329_v20 = vadd.f32 %v1887_v45, %v1232_v50 }
 0x172   : > { %v1827_v11 = vpop.f32.mrb[60].mxu0  ;;  %v2563_v58 = vadd.f32 %v1890_v53, %v1235_v56 }
 0x173   : > { %v1891_v59 = vpop.f32.mrb[60].mxu1  ;;  %v1828_v60 = vpop.f32.mrb[61].mxu0 }
 0x174   : > { %v1829_v22 = vadd.f32 %v1828_v60, %v1827_v11  ;;  %v1892_v62 = vpop.f32.mrb[61].mxu1  ;;  %v1830_v0 = vpop.f32.mrb[62].mxu0 }
 0x175   : > { %v1893_v1 = vadd.f32 %v1892_v62, %v1891_v59  ;;  %v1894_v2 = vpop.f32.mrb[62].mxu1  ;;  %v1831_v40 = vpop.f32.mrb[63].mxu0 }
 0x176   : > { %v1240_v27 = vadd.f32 %v1829_v22, %v2526_v46  ;;  %v1832_v7 = vadd.f32 %v1831_v40, %v1830_v0  ;;  %v1895_v8 = vpop.f32.mrb[63].mxu1 }
 0x177   : > { %v1896_v10 = vadd.f32 %v1895_v8, %v1894_v2 }
 0x178   : > { %v1243_v29 = vadd.f32 %v1832_v7, %v2529_v48  ;;  %v1337_v12 = vadd.f32 %v1893_v1, %v1240_v27 }
 0x17a   : > { %v1931_v36 = vpop.f32.mrb[64].mxu0  ;;  %v1340_v13 = vadd.f32 %v1896_v10, %v1243_v29 }
 0x17b   : > { %v1386_v14 = vadd.f32 %v1931_v36, %v2539_v21  ;;  %v1939_v15 = vpop.f32.mrb[64].mxu1  ;;  %v1377_v38 = vpop.f32.mrb[65].mxu0 }
 0x17c   : > { %v1418_v46 = vadd.f32 %v1939_v15, %v1321_v57  ;;  %v1378_v52 = vadd.f32 %v1377_v38, %v2533_v3  ;;  %v1409_v18 = vpop.f32.mrb[65].mxu1  ;;  %v1932_v48 = vpop.f32.mrb[66].mxu0 }
 0x17d   : > { %v1442_v19 = vmax.f32 %v1386_v14, 0.0  ;;  %v1410_v54 = vadd.f32 %v1409_v18, %v1313_v16  ;;  %v1389_v23 = vadd.f32 %v1932_v48, %v2541_v24  ;;  %v1940_v21 = vpop.f32.mrb[66].mxu1  ;;  %v1380_v25 = vpop.f32.mrb[67].mxu0 }
 0x17e   : > { %v1450_v26 = vmax.f32 %v1418_v46, 0.0  ;;  %v1440_v28 = vmax.f32 %v1378_v52, 0.0  ;;  %v1421_v30 = vadd.f32 %v1940_v21, %v1324_v35  ;;  %v1381_v31 = vadd.f32 %v1380_v25, %v2535_v5  ;;  %v1412_v3 = vpop.f32.mrb[67].mxu1 }
 0x17f   : > { %1458 = vst [vmem:[%s2572_s19 + $0x10] sm:$0xff] %v1442_v19  ;;  %v1448_v55 = vmax.f32 %v1410_v54, 0.0  ;;  %v1443_v32 = vmax.f32 %v1389_v23, 0.0  ;;  %v1413_v16 = vadd.f32 %v1412_v3, %v2557_v17 }
 0x180   : > { %1466 = vst [vmem:[%s2572_s19 + $0x50] sm:$0xff] %v1450_v26  ;;  %1456 = vst [vmem:[%s2572_s19] sm:$0xff] %v1440_v28  ;;  %v1451_v24 = vmax.f32 %v1421_v30, 0.0  ;;  %v1441_v33 = vmax.f32 %v1381_v31, 0.0 }
 0x181   : > { %1464 = vst [vmem:[%s2572_s19 + $0x40] sm:$0xff] %v1448_v55  ;;  %1459 = vst [vmem:[%s2572_s19 + $0x18] sm:$0xff] %v1443_v32  ;;  %v1449_v34 = vmax.f32 %v1413_v16, 0.0 }
 0x182   : > { %1467 = vst [vmem:[%s2572_s19 + $0x58] sm:$0xff] %v1451_v24  ;;  %1457 = vst [vmem:[%s2572_s19 + $0x8] sm:$0xff] %v1441_v33  ;;  %v1935_v57 = vpop.f32.mrb[68].mxu0 }
 0x183   : > { %1465 = vst [vmem:[%s2572_s19 + $0x48] sm:$0xff] %v1449_v34  ;;  %v1402_v5 = vadd.f32 %v1935_v57, %v2551_v61  ;;  %v1943_v4 = vpop.f32.mrb[68].mxu1  ;;  %v1393_v35 = vpop.f32.mrb[69].mxu0 }
 0x184   : > { %v1434_v37 = vadd.f32 %v1943_v4, %v1337_v12  ;;  %v1394_v39 = vadd.f32 %v1393_v35, %v2545_v41  ;;  %v1425_v17 = vpop.f32.mrb[69].mxu1  ;;  %v1936_v6 = vpop.f32.mrb[70].mxu0 }
 0x185   : > { %v1446_v42 = vmax.f32 %v1402_v5, 0.0  ;;  %v1426_v44 = vadd.f32 %v1425_v17, %v1329_v20  ;;  %v1405_v45 = vadd.f32 %v1936_v6, %v2553_v63  ;;  %v1944_v47 = vpop.f32.mrb[70].mxu1  ;;  %v1396_v49 = vpop.f32.mrb[71].mxu0 }
 0x186   : > { %v1454_v50 = vmax.f32 %v1434_v37, 0.0  ;;  %v1444_v61 = vmax.f32 %v1394_v39, 0.0  ;;  %v1437_v51 = vadd.f32 %v1944_v47, %v1340_v13  ;;  %v1397_v41 = vadd.f32 %v1396_v49, %v2547_v43  ;;  %v1428_v9 = vpop.f32.mrb[71].mxu1 }
 0x187   : > { %1462 = vst [vmem:[%s2572_s19 + $0x30] sm:$0xff] %v1446_v42  ;;  %v1452_v53 = vmax.f32 %v1426_v44, 0.0  ;;  %v1447_v56 = vmax.f32 %v1405_v45, 0.0  ;;  %v1429_v20 = vadd.f32 %v1428_v9, %v2563_v58 }
 0x188   : > { %1470 = vst [vmem:[%s2572_s19 + $0x70] sm:$0xff] %v1454_v50  ;;  %1460 = vst [vmem:[%s2572_s19 + $0x20] sm:$0xff] %v1444_v61  ;;  %v1455_v63 = vmax.f32 %v1437_v51, 0.0  ;;  %v1445_v11 = vmax.f32 %v1397_v41, 0.0 }
 0x189   : > { %1468 = vst [vmem:[%s2572_s19 + $0x60] sm:$0xff] %v1452_v53  ;;  %1463 = vst [vmem:[%s2572_s19 + $0x38] sm:$0xff] %v1447_v56  ;;  %v1453_v59 = vmax.f32 %v1429_v20, 0.0 }
 0x18a   : > { %1471 = vst [vmem:[%s2572_s19 + $0x78] sm:$0xff] %v1455_v63  ;;  %1461 = vst [vmem:[%s2572_s19 + $0x28] sm:$0xff] %v1445_v11 }
 0x18b   : > { %1469 = vst [vmem:[%s2572_s19 + $0x68] sm:$0xff] %v1453_v59 }
 0x18c PF: > { %s13_s12 = sadd.s32 1, %s2088_s12  }
 0x18d   : > { %p10_p4 = scmp.ge.s32.totalorder %s13_s12, 6  }
 0x18f   :  { %12 = sbr.rel (!%p10_p4) target bundleno = 1 (0x1), region = 62 }

</bundles_post_ra>
